<compile_context>
chip_gen: v6e
topology: v6e:2x2x1
jax: 0.10.0
libtpu: 0.0.40
codegen_flags: <defaults>
</compile_context>

<pallas_src>
import functools

import jax
import jax.numpy as jnp
from jax import lax
from jax.experimental import pallas as pl
from jax.experimental.pallas import tpu as pltpu


def _log_sigmoid(x):
    # Stable log(sigmoid(x)) = min(x, 0) - log(1 + exp(-|x|)).
    return jnp.minimum(x, 0.0) - jnp.log(1.0 + jnp.exp(-jnp.abs(x)))


def _neg_sample_loss_kernel(in_ref, out_ref, noise_ref, loss_ref, *,
                            tb, nk, n_noise, embed, batch):
    i = pl.program_id(0)            # batch-tile index
    k = pl.program_id(1)            # noise-sample-chunk index (reduction axis)

    @pl.when(k == 0)
    def _():
        loss_ref[...] = jnp.zeros_like(loss_ref)

    inp = in_ref[...].astype(jnp.float32)      # (TB, E)
    pos = out_ref[...].astype(jnp.float32)     # (TB, E)

    # Lane-packed score slab (TB, 128): lane 0 = positive score, lanes 1..nk =
    # this chunk's negative scores.  Each score is an MXU reduce of an
    # elementwise product against a one-hot column selector, keeping the
    # E-reduction off the XLU (MXU is otherwise idle in this op).
    col = lax.broadcasted_iota(jnp.int32, (embed, 128), 1)
    scores = jnp.dot(inp * pos, (col == 0).astype(jnp.float32),
                     preferred_element_type=jnp.float32)           # (TB, 128)

    ragged_k = (n_noise % nk) != 0   # static: only mask chunks if N % nk != 0
    for j in range(nk):
        chunk = noise_ref[:, j * embed:(j + 1) * embed].astype(jnp.float32)
        if ragged_k:
            # Zero out-of-range sample chunks (partial last block along the
            # sample axis holds garbage); prevents Inf/NaN leaking through the
            # matmul into valid lanes of valid rows.
            chunk = jnp.where(k * nk + j < n_noise, chunk, 0.0)
        sel = (col == (j + 1)).astype(jnp.float32)
        scores = scores + jnp.dot(inp * chunk, sel,
                                  preferred_element_type=jnp.float32)

    lane = lax.broadcasted_iota(jnp.int32, (tb, 128), 1)
    row = i * tb + lax.broadcasted_iota(jnp.int32, (tb, 128), 0)
    sign = jnp.where(lane == 0, 1.0, -1.0).astype(jnp.float32)

    pos_valid = (lane == 0) & (k == 0)
    sample_idx = k * nk + (lane - 1)
    neg_valid = (lane >= 1) & (lane <= nk) & (sample_idx < n_noise)
    valid = (pos_valid | neg_valid) & (row < batch)   # also masks batch padding

    # Single batched log-sigmoid over the whole lane-packed slab (one EUP pass
    # instead of N+1 lane-sparse passes).
    ls = jnp.where(valid, _log_sigmoid(sign * scores), 0.0)

    col_sums = jnp.sum(ls, axis=0, keepdims=True)        # (1, 128) VPU adds
    partial = jnp.sum(col_sums, axis=1, keepdims=True)   # (1, 1)
    loss_ref[...] += jnp.broadcast_to(partial, (8, 128))


def _round_up(x, m):
    return ((x + m - 1) // m) * m


def negative_sample_loss(input_vectors, output_vectors, noise_vectors):
    B, E = input_vectors.shape
    Bn, N, En = noise_vectors.shape
    assert Bn == B and En == E and N >= 1

    # --- embedding dim must be lane aligned so chunk slices are free views ---
    # TODO(synk): pad the embedding dim once in the model instead, so this copy
    # (only taken when E % 128 != 0) never happens on the hot path.
    if E % 128 != 0:
        e_pad = _round_up(E, 128)
        input_vectors = jnp.pad(input_vectors, ((0, 0), (0, e_pad - E)))
        output_vectors = jnp.pad(output_vectors, ((0, 0), (0, e_pad - E)))
        noise_vectors = jnp.pad(noise_vectors, ((0, 0), (0, 0), (0, e_pad - E)))
        E = e_pad

    # Lane-dense noise slab: contiguous reshape, no copy. No batch padding at
    # all -- ragged batch tiles are handled in-kernel by the row mask.
    noise2d = noise_vectors.reshape(B, N * E)

    itemsize = jnp.dtype(noise_vectors.dtype).itemsize

    # --- generation-aware VMEM budget (64 MiB on v7x, 128 MiB on v5e/v6e) ----
    try:
        vmem_cap = int(pltpu.get_tpu_info().vmem_capacity_bytes)
    except Exception:  # conservative fallback: assume the smallest (v7x) VMEM
        vmem_cap = 64 * 1024 * 1024
    vmem_limit = max(min((vmem_cap * 3) // 4, 96 * 1024 * 1024),
                     32 * 1024 * 1024)           # 48 MiB v7x, 96 MiB v5e/v6e
    vmem_budget = (vmem_limit * 2) // 3          # double-buffered operand bytes

    rows8 = _round_up(B, 8)

    # --- pick noise samples per grid step (nk) and batch tile (tb) -----------
    def tb_for(nk_):
        per_row = (nk_ + 2) * E * itemsize       # noise chunk + input + output
        return vmem_budget // (2 * per_row)      # 2x: double buffering

    nk = min(N, 32, 127)                         # short unroll, <=127 score lanes
    while nk > 1 and tb_for(nk) < min(512, rows8):
        nk = max(1, nk // 2)                     # shrink chunk to keep >=512-row tiles

    tb = min(tb_for(nk), 4096, rows8)
    half = _round_up(-(-rows8 // 2), 8)          # keep >=2 tiles for v7x megacore
    if half >= 512:
        tb = min(tb, half)
    tb = max(8, (tb // 8) * 8)

    num_tiles = pl.cdiv(B, tb)
    num_k = pl.cdiv(N, nk)

    kernel = functools.partial(
        _neg_sample_loss_kernel, tb=tb, nk=nk, n_noise=N, embed=E, batch=B)

    cost = pl.CostEstimate(
        flops=2 * B * (N + 1) * E * 128,         # MXU one-hot reduce work
        transcendentals=2 * B * (N + 1),
        bytes_accessed=int(B * (N + 2) * E * itemsize + num_tiles * 8 * 128 * 4),
    )

    partials = pl.pallas_call(
        kernel,
        out_shape=jax.ShapeDtypeStruct((num_tiles * 8, 128), jnp.float32),
        grid=(num_tiles, num_k),
        in_specs=[
            pl.BlockSpec((tb, E), lambda i, k: (i, 0)),
            pl.BlockSpec((tb, E), lambda i, k: (i, 0)),
            pl.BlockSpec((tb, nk * E), lambda i, k: (i, k)),
        ],
        out_specs=pl.BlockSpec((8, 128), lambda i, k: (i, 0)),
        compiler_params=pltpu.CompilerParams(
            dimension_semantics=("parallel", "arbitrary"),
            vmem_limit_bytes=int(vmem_limit),
        ),
        cost_estimate=cost,
    )(input_vectors, output_vectors, noise2d)

    # Tiny final reduction over per-tile partial sums (num_tiles scalars).
    per_tile = partials.reshape(num_tiles, 8 * 128)[:, 0]
    return -(jnp.sum(per_tile) / B)


def negative_sample_loss_ref(input_vectors, output_vectors, noise_vectors):
    # Pure-JAX reference mirroring the PyTorch code path.
    out_score = jnp.sum(output_vectors * input_vectors, axis=-1)
    out_loss = jnp.log(jax.nn.sigmoid(out_score))
    noise_score = jnp.einsum("bne,be->bn", noise_vectors, input_vectors)
    noise_loss = jnp.sum(jnp.log(jax.nn.sigmoid(-noise_score)), axis=1)
    return -jnp.mean(out_loss + noise_loss)


if __name__ == "__main__":
    key = jax.random.PRNGKey(0)
    k1, k2, k3 = jax.random.split(key, 3)

    # batch_size=5 as in the module's script; lane-dense embed (128); 8 noise samples.
    B, E, N = 5, 128, 8
    input_vectors = jax.random.normal(k1, (B, E), dtype=jnp.float32) * 0.1
    output_vectors = jax.random.normal(k2, (B, E), dtype=jnp.float32) * 0.1
    noise_vectors = jax.random.normal(k3, (B, N, E), dtype=jnp.float32) * 0.1

    loss = negative_sample_loss(input_vectors, output_vectors, noise_vectors)
    jax.block_until_ready(loss)

    ref = negative_sample_loss_ref(input_vectors, output_vectors, noise_vectors)
    # Tolerance leaves margin for the MXU f32 reduce path (per-score error is
    # far below this; any structural bug shifts the loss by >> 1e-3).
    assert jnp.allclose(loss, ref, rtol=1e-4, atol=1e-5), (loss, ref)

    print("KERNEL_OK")
</pallas_src>

<mosaic_0001>
module attributes {stable_mosaic.version = 11 : i64} {
  func.func @_neg_sample_loss_kernel(%arg0: i32, %arg1: i32, %arg2: memref<8x128xf32, #tpu.memory_space<vmem>>, %arg3: memref<8x128xf32, #tpu.memory_space<vmem>>, %arg4: memref<8x1024xf32, #tpu.memory_space<vmem>>, %arg5: memref<8x128xf32, #tpu.memory_space<vmem>>) attributes {dimension_semantics = [#tpu.dimension_semantics<parallel>, #tpu.dimension_semantics<arbitrary>], iteration_bounds = array<i64: 1, 1>, scalar_prefetch = 0 : i64, scratch_operands = 0 : i64, tpu.core_type = #tpu.core_type<tc>, window_params = [{transform_indices = @transform_0, window_bounds = array<i64: 8, 128>}, {transform_indices = @transform_1, window_bounds = array<i64: 8, 128>}, {transform_indices = @transform_2, window_bounds = array<i64: 8, 1024>}, {transform_indices = @transform_3, window_bounds = array<i64: 8, 128>}]} {
    %c0_i32 = arith.constant 0 : i32
    %0 = arith.cmpi eq, %arg1, %c0_i32 : i32
    %1 = arith.extui %0 : i1 to i32
    %c0_i32_0 = arith.constant 0 : i32
    %2 = arith.cmpi ne, %1, %c0_i32_0 : i32
    scf.if %2 {
      %cst_44 = arith.constant 0.000000e+00 : f32
      %130 = vector.broadcast %cst_44 : f32 to vector<8x128xf32>
      %c0_45 = arith.constant 0 : index
      %c0_46 = arith.constant 0 : index
      %131 = vector.load %arg5[%c0_45, %c0_46] : memref<8x128xf32, #tpu.memory_space<vmem>>, vector<8x128xf32>
      tpu.vector_store %arg5[%c0_45, %c0_46], %130 {strides = array<i32>} : memref<8x128xf32, #tpu.memory_space<vmem>>, vector<8x128xf32>,
    } else {
    }
    %c0 = arith.constant 0 : index
    %c0_1 = arith.constant 0 : index
    %3 = vector.load %arg2[%c0, %c0_1] : memref<8x128xf32, #tpu.memory_space<vmem>>, vector<8x128xf32>
    %c0_2 = arith.constant 0 : index
    %c0_3 = arith.constant 0 : index
    %4 = vector.load %arg3[%c0_2, %c0_3] : memref<8x128xf32, #tpu.memory_space<vmem>>, vector<8x128xf32>
    %5 = tpu.iota {dimensions = array<i32: 1>} : vector<128x128xi32>
    %6 = arith.mulf %3, %4 : vector<8x128xf32>
    %c0_i32_4 = arith.constant 0 : i32
    %7 = vector.broadcast %c0_i32_4 : i32 to vector<128x128xi32>
    %8 = arith.cmpi eq, %5, %7 : vector<128x128xi32>
    %9 = arith.extui %8 : vector<128x128xi1> to vector<128x128xi32>
    %10 = arith.sitofp %9 : vector<128x128xi32> to vector<128x128xf32>
    %cst = arith.constant dense<0.000000e+00> : vector<8x128xf32>
    %11 = tpu.matmul %6, %10, %cst {dimension_numbers = #tpu.dot_dimension_numbers<[1], [0], [0], [1], [0, 0, 1, 1], [], []>} : vector<8x128xf32>, vector<128x128xf32>, vector<8x128xf32> -> vector<8x128xf32>
    %c0_5 = arith.constant 0 : index
    %c0_6 = arith.constant 0 : index
    %12 = vector.load %arg4[%c0_5, %c0_6] : memref<8x1024xf32, #tpu.memory_space<vmem>>, vector<8x128xf32>
    %c1_i32 = arith.constant 1 : i32
    %13 = vector.broadcast %c1_i32 : i32 to vector<128x128xi32>
    %14 = arith.cmpi eq, %5, %13 : vector<128x128xi32>
    %15 = arith.extui %14 : vector<128x128xi1> to vector<128x128xi32>
    %16 = arith.sitofp %15 : vector<128x128xi32> to vector<128x128xf32>
    %17 = arith.mulf %3, %12 : vector<8x128xf32>
    %cst_7 = arith.constant dense<0.000000e+00> : vector<8x128xf32>
    %18 = tpu.matmul %17, %16, %cst_7 {dimension_numbers = #tpu.dot_dimension_numbers<[1], [0], [0], [1], [0, 0, 1, 1], [], []>} : vector<8x128xf32>, vector<128x128xf32>, vector<8x128xf32> -> vector<8x128xf32>
    %19 = arith.addf %11, %18 : vector<8x128xf32>
    %c0_8 = arith.constant 0 : index
    %c128 = arith.constant 128 : index
    %20 = vector.load %arg4[%c0_8, %c128] : memref<8x1024xf32, #tpu.memory_space<vmem>>, vector<8x128xf32>
    %c2_i32 = arith.constant 2 : i32
    %21 = vector.broadcast %c2_i32 : i32 to vector<128x128xi32>
    %22 = arith.cmpi eq, %5, %21 : vector<128x128xi32>
    %23 = arith.extui %22 : vector<128x128xi1> to vector<128x128xi32>
    %24 = arith.sitofp %23 : vector<128x128xi32> to vector<128x128xf32>
    %25 = arith.mulf %3, %20 : vector<8x128xf32>
    %cst_9 = arith.constant dense<0.000000e+00> : vector<8x128xf32>
    %26 = tpu.matmul %25, %24, %cst_9 {dimension_numbers = #tpu.dot_dimension_numbers<[1], [0], [0], [1], [0, 0, 1, 1], [], []>} : vector<8x128xf32>, vector<128x128xf32>, vector<8x128xf32> -> vector<8x128xf32>
    %27 = arith.addf %19, %26 : vector<8x128xf32>
    %c0_10 = arith.constant 0 : index
    %c256 = arith.constant 256 : index
    %28 = vector.load %arg4[%c0_10, %c256] : memref<8x1024xf32, #tpu.memory_space<vmem>>, vector<8x128xf32>
    %c3_i32 = arith.constant 3 : i32
    %29 = vector.broadcast %c3_i32 : i32 to vector<128x128xi32>
    %30 = arith.cmpi eq, %5, %29 : vector<128x128xi32>
    %31 = arith.extui %30 : vector<128x128xi1> to vector<128x128xi32>
    %32 = arith.sitofp %31 : vector<128x128xi32> to vector<128x128xf32>
    %33 = arith.mulf %3, %28 : vector<8x128xf32>
    %cst_11 = arith.constant dense<0.000000e+00> : vector<8x128xf32>
    %34 = tpu.matmul %33, %32, %cst_11 {dimension_numbers = #tpu.dot_dimension_numbers<[1], [0], [0], [1], [0, 0, 1, 1], [], []>} : vector<8x128xf32>, vector<128x128xf32>, vector<8x128xf32> -> vector<8x128xf32>
    %35 = arith.addf %27, %34 : vector<8x128xf32>
    %c0_12 = arith.constant 0 : index
    %c384 = arith.constant 384 : index
    %36 = vector.load %arg4[%c0_12, %c384] : memref<8x1024xf32, #tpu.memory_space<vmem>>, vector<8x128xf32>
    %c4_i32 = arith.constant 4 : i32
    %37 = vector.broadcast %c4_i32 : i32 to vector<128x128xi32>
    %38 = arith.cmpi eq, %5, %37 : vector<128x128xi32>
    %39 = arith.extui %38 : vector<128x128xi1> to vector<128x128xi32>
    %40 = arith.sitofp %39 : vector<128x128xi32> to vector<128x128xf32>
    %41 = arith.mulf %3, %36 : vector<8x128xf32>
    %cst_13 = arith.constant dense<0.000000e+00> : vector<8x128xf32>
    %42 = tpu.matmul %41, %40, %cst_13 {dimension_numbers = #tpu.dot_dimension_numbers<[1], [0], [0], [1], [0, 0, 1, 1], [], []>} : vector<8x128xf32>, vector<128x128xf32>, vector<8x128xf32> -> vector<8x128xf32>
    %43 = arith.addf %35, %42 : vector<8x128xf32>
    %c0_14 = arith.constant 0 : index
    %c512 = arith.constant 512 : index
    %44 = vector.load %arg4[%c0_14, %c512] : memref<8x1024xf32, #tpu.memory_space<vmem>>, vector<8x128xf32>
    %c5_i32 = arith.constant 5 : i32
    %45 = vector.broadcast %c5_i32 : i32 to vector<128x128xi32>
    %46 = arith.cmpi eq, %5, %45 : vector<128x128xi32>
    %47 = arith.extui %46 : vector<128x128xi1> to vector<128x128xi32>
    %48 = arith.sitofp %47 : vector<128x128xi32> to vector<128x128xf32>
    %49 = arith.mulf %3, %44 : vector<8x128xf32>
    %cst_15 = arith.constant dense<0.000000e+00> : vector<8x128xf32>
    %50 = tpu.matmul %49, %48, %cst_15 {dimension_numbers = #tpu.dot_dimension_numbers<[1], [0], [0], [1], [0, 0, 1, 1], [], []>} : vector<8x128xf32>, vector<128x128xf32>, vector<8x128xf32> -> vector<8x128xf32>
    %51 = arith.addf %43, %50 : vector<8x128xf32>
    %c0_16 = arith.constant 0 : index
    %c640 = arith.constant 640 : index
    %52 = vector.load %arg4[%c0_16, %c640] : memref<8x1024xf32, #tpu.memory_space<vmem>>, vector<8x128xf32>
    %c6_i32 = arith.constant 6 : i32
    %53 = vector.broadcast %c6_i32 : i32 to vector<128x128xi32>
    %54 = arith.cmpi eq, %5, %53 : vector<128x128xi32>
    %55 = arith.extui %54 : vector<128x128xi1> to vector<128x128xi32>
    %56 = arith.sitofp %55 : vector<128x128xi32> to vector<128x128xf32>
    %57 = arith.mulf %3, %52 : vector<8x128xf32>
    %cst_17 = arith.constant dense<0.000000e+00> : vector<8x128xf32>
    %58 = tpu.matmul %57, %56, %cst_17 {dimension_numbers = #tpu.dot_dimension_numbers<[1], [0], [0], [1], [0, 0, 1, 1], [], []>} : vector<8x128xf32>, vector<128x128xf32>, vector<8x128xf32> -> vector<8x128xf32>
    %59 = arith.addf %51, %58 : vector<8x128xf32>
    %c0_18 = arith.constant 0 : index
    %c768 = arith.constant 768 : index
    %60 = vector.load %arg4[%c0_18, %c768] : memref<8x1024xf32, #tpu.memory_space<vmem>>, vector<8x128xf32>
    %c7_i32 = arith.constant 7 : i32
    %61 = vector.broadcast %c7_i32 : i32 to vector<128x128xi32>
    %62 = arith.cmpi eq, %5, %61 : vector<128x128xi32>
    %63 = arith.extui %62 : vector<128x128xi1> to vector<128x128xi32>
    %64 = arith.sitofp %63 : vector<128x128xi32> to vector<128x128xf32>
    %65 = arith.mulf %3, %60 : vector<8x128xf32>
    %cst_19 = arith.constant dense<0.000000e+00> : vector<8x128xf32>
    %66 = tpu.matmul %65, %64, %cst_19 {dimension_numbers = #tpu.dot_dimension_numbers<[1], [0], [0], [1], [0, 0, 1, 1], [], []>} : vector<8x128xf32>, vector<128x128xf32>, vector<8x128xf32> -> vector<8x128xf32>
    %67 = arith.addf %59, %66 : vector<8x128xf32>
    %c0_20 = arith.constant 0 : index
    %c896 = arith.constant 896 : index
    %68 = vector.load %arg4[%c0_20, %c896] : memref<8x1024xf32, #tpu.memory_space<vmem>>, vector<8x128xf32>
    %c8_i32 = arith.constant 8 : i32
    %69 = vector.broadcast %c8_i32 : i32 to vector<128x128xi32>
    %70 = arith.cmpi eq, %5, %69 : vector<128x128xi32>
    %71 = arith.extui %70 : vector<128x128xi1> to vector<128x128xi32>
    %72 = arith.sitofp %71 : vector<128x128xi32> to vector<128x128xf32>
    %73 = arith.mulf %3, %68 : vector<8x128xf32>
    %cst_21 = arith.constant dense<0.000000e+00> : vector<8x128xf32>
    %74 = tpu.matmul %73, %72, %cst_21 {dimension_numbers = #tpu.dot_dimension_numbers<[1], [0], [0], [1], [0, 0, 1, 1], [], []>} : vector<8x128xf32>, vector<128x128xf32>, vector<8x128xf32> -> vector<8x128xf32>
    %75 = arith.addf %67, %74 : vector<8x128xf32>
    %76 = tpu.iota {dimensions = array<i32: 1>} : vector<8x128xi32>
    %c8_i32_22 = arith.constant 8 : i32
    %77 = arith.muli %arg0, %c8_i32_22 : i32
    %78 = tpu.iota {dimensions = array<i32: 0>} : vector<8x128xi32>
    %79 = vector.broadcast %77 : i32 to vector<8x128xi32>
    %80 = arith.addi %79, %78 : vector<8x128xi32>
    %c0_i32_23 = arith.constant 0 : i32
    %81 = vector.broadcast %c0_i32_23 : i32 to vector<8x128xi32>
    %82 = arith.cmpi eq, %76, %81 : vector<8x128xi32>
    %cst_24 = arith.constant 1.000000e+00 : f32
    %cst_25 = arith.constant -1.000000e+00 : f32
    %83 = vector.broadcast %cst_24 : f32 to vector<8x128xf32>
    %84 = vector.broadcast %cst_25 : f32 to vector<8x128xf32>
    %85 = arith.select %82, %83, %84 : vector<8x128xi1>, vector<8x128xf32>
    %c0_i32_26 = arith.constant 0 : i32
    %86 = vector.broadcast %c0_i32_26 : i32 to vector<8x128xi32>
    %87 = arith.cmpi eq, %76, %86 : vector<8x128xi32>
    %c0_i32_27 = arith.constant 0 : i32
    %88 = arith.cmpi eq, %arg1, %c0_i32_27 : i32
    %89 = vector.broadcast %88 : i1 to vector<8x128xi1>
    %90 = arith.andi %87, %89 : vector<8x128xi1>
    %c8_i32_28 = arith.constant 8 : i32
    %91 = arith.muli %arg1, %c8_i32_28 : i32
    %c1_i32_29 = arith.constant 1 : i32
    %92 = vector.broadcast %c1_i32_29 : i32 to vector<8x128xi32>
    %93 = arith.subi %76, %92 : vector<8x128xi32>
    %94 = vector.broadcast %91 : i32 to vector<8x128xi32>
    %95 = arith.addi %94, %93 : vector<8x128xi32>
    %c1_i32_30 = arith.constant 1 : i32
    %96 = vector.broadcast %c1_i32_30 : i32 to vector<8x128xi32>
    %97 = arith.cmpi sge, %76, %96 : vector<8x128xi32>
    %c8_i32_31 = arith.constant 8 : i32
    %98 = vector.broadcast %c8_i32_31 : i32 to vector<8x128xi32>
    %99 = arith.cmpi sle, %76, %98 : vector<8x128xi32>
    %100 = arith.andi %97, %99 : vector<8x128xi1>
    %c8_i32_32 = arith.constant 8 : i32
    %101 = vector.broadcast %c8_i32_32 : i32 to vector<8x128xi32>
    %102 = arith.cmpi slt, %95, %101 : vector<8x128xi32>
    %103 = arith.andi %100, %102 : vector<8x128xi1>
    %104 = arith.ori %90, %103 : vector<8x128xi1>
    %c5_i32_33 = arith.constant 5 : i32
    %105 = vector.broadcast %c5_i32_33 : i32 to vector<8x128xi32>
    %106 = arith.cmpi slt, %80, %105 : vector<8x128xi32>
    %107 = arith.andi %104, %106 : vector<8x128xi1>
    %108 = arith.mulf %85, %75 : vector<8x128xf32>
    %cst_34 = arith.constant 0.000000e+00 : f32
    %109 = vector.broadcast %cst_34 : f32 to vector<8x128xf32>
    %110 = arith.minimumf %108, %109 : vector<8x128xf32>
    %111 = math.absf %108 : vector<8x128xf32>
    %cst_35 = arith.constant 0.000000e+00 : f32
    %112 = vector.broadcast %cst_35 : f32 to vector<8x128xf32>
    %113 = arith.subf %112, %111 : vector<8x128xf32>
    %114 = math.exp %113 : vector<8x128xf32>
    %cst_36 = arith.constant 1.000000e+00 : f32
    %115 = vector.broadcast %cst_36 : f32 to vector<8x128xf32>
    %116 = arith.addf %115, %114 : vector<8x128xf32>
    %117 = math.log %116 : vector<8x128xf32>
    %118 = arith.subf %110, %117 : vector<8x128xf32>
    %cst_37 = arith.constant 0.000000e+00 : f32
    %119 = vector.broadcast %cst_37 : f32 to vector<8x128xf32>
    %120 = arith.select %107, %118, %119 : vector<8x128xi1>, vector<8x128xf32>
    %cst_38 = arith.constant dense<0.000000e+00> : vector<128xf32>
    %121 = vector.multi_reduction <add>, %120, %cst_38 [0] : vector<8x128xf32> to vector<128xf32>
    %122 = vector.shape_cast %121 : vector<128xf32> to vector<1x128xf32>
    %cst_39 = arith.constant dense<0.000000e+00> : vector<1xf32>
    %123 = vector.multi_reduction <add>, %122, %cst_39 [1] : vector<1x128xf32> to vector<1xf32>
    %124 = vector.shape_cast %123 : vector<1xf32> to vector<1x1xf32>
    %c0_40 = arith.constant 0 : index
    %c0_41 = arith.constant 0 : index
    %125 = vector.load %arg5[%c0_40, %c0_41] : memref<8x128xf32, #tpu.memory_space<vmem>>, vector<8x128xf32>
    %126 = vector.shape_cast %124 : vector<1x1xf32> to vector<1x1xf32>
    %127 = vector.broadcast %126 : vector<1x1xf32> to vector<8x128xf32>
    %128 = arith.addf %125, %127 : vector<8x128xf32>
    %c0_42 = arith.constant 0 : index
    %c0_43 = arith.constant 0 : index
    %129 = vector.load %arg5[%c0_42, %c0_43] : memref<8x128xf32, #tpu.memory_space<vmem>>, vector<8x128xf32>
    tpu.vector_store %arg5[%c0_42, %c0_43], %128 {strides = array<i32>} : memref<8x128xf32, #tpu.memory_space<vmem>>, vector<8x128xf32>,
    return
  }
  func.func @transform_0(%arg0: i32, %arg1: i32) -> (i32, i32) {
    %c0_i32 = arith.constant 0 : i32
    %c0_i32_0 = arith.constant 0 : i32
    return %arg0, %c0_i32 : i32, i32
  }
  func.func @transform_1(%arg0: i32, %arg1: i32) -> (i32, i32) {
    %c0_i32 = arith.constant 0 : i32
    %c0_i32_0 = arith.constant 0 : i32
    return %arg0, %c0_i32 : i32, i32
  }
  func.func @transform_2(%arg0: i32, %arg1: i32) -> (i32, i32) {
    %c0_i32 = arith.constant 0 : i32
    return %arg0, %arg1 : i32, i32
  }
  func.func @transform_3(%arg0: i32, %arg1: i32) -> (i32, i32) {
    %c0_i32 = arith.constant 0 : i32
    %c0_i32_0 = arith.constant 0 : i32
    return %arg0, %c0_i32 : i32, i32
  }
}

</mosaic_0001>

<bundles_post_ra>
// kernel: tpu_custom_call.1
= control target key start
LH: loop header
LB: loop body
LE: loop exit
PB: predicated region body
PF: predicated region fallthrough
CT: control target
= control target key end

     0   :  { %8 = vsyncpa [#allocation3], 0  ;;  %s2185_s0 = inlined_call_operand.hbm [shape: f32[5,128], index: 0, kind: input, shape index: {}]   ;;  %s2186_s1 = inlined_call_operand.hbm [shape: f32[5,128], index: 1, kind: input, shape index: {}]   ;;  %s2187_s2 = inlined_call_operand.hbm [shape: f32[5,1024], index: 2, kind: input, shape index: {}]   ;;  %s2188_s3 = inlined_call_operand.hbm [shape: f32[8,128], index: 3, kind: output, shape index: {}]  }
   0x1   :  { %9 = vsyncpa [#allocation6], 0 }
   0x2   :  { %10 = vsyncpa [#allocation4], 0  ;;  %s1520_s12 = smov [#allocation5]   ;;  %s1521_s14 = smov [#allocation2]  }
   0x3   :  { %s27_s13 = sshll.u32 %s1520_s12, 4  ;;  %s17_s15 = sshll.u32 %s1521_s14, 4  ;;  %s28_s13 = int_to_ptr.vmem [resolvable:$true] %s27_s13  ;;  %s18_s15 = int_to_ptr.vmem [resolvable:$true] %s17_s15 }
   0x4   :  { %s1442_s16 = scalar_lea.vmem %s28_s13, 128  ;;  %p1447_p1 = scmp.lt.s32.totalorder %s28_s13, %s28_s13 }
   0x5   :  { %p1443_p0 = scmp.ne.s32.totalorder %s28_s13, %s1442_s16  ;;  %p1448_p2 = scmp.lt.s32.totalorder %s1442_s16, %s1442_s16 }
   0x7   :  { %p1449_p3 = por %p1448_p2, %p1447_p1 }
   0x9   :  { %p1450_p4 = pnand %p1449_p3, %p1443_p0 }
   0xb   :  { %1453 = shalt.err (!%p1450_p4)
}
   0xc   :  { %30 = dma.hbm_to_vmem [thread:$0]  %s2186_s1, 128, %s28_s13, [#allocation6]  }
   0xd   :  { %s1462_s19 = scalar_lea.vmem %s18_s15, 128  ;;  %p1467_p6 = scmp.lt.s32.totalorder %s18_s15, %s18_s15 }
   0xe   :  { %p1463_p5 = scmp.ne.s32.totalorder %s18_s15, %s1462_s19  ;;  %p1468_p7 = scmp.lt.s32.totalorder %s1462_s19, %s1462_s19 }
  0x10   :  { %p1469_p8 = por %p1468_p7, %p1467_p6 }
  0x12   :  { %p1470_p9 = pnand %p1469_p8, %p1463_p5 }
  0x14   :  { %1473 = shalt.err (!%p1470_p9)
}
  0x15   :  { %20 = dma.hbm_to_vmem [thread:$0]  %s2185_s0, 128, %s18_s15, [#allocation3]  }
  0x16   :  { %s1522_s22 = smov [#allocation7]  }
  0x17   :  { %s37_s23 = sshll.u32 %s1522_s22, 4  ;;  %s38_s23 = int_to_ptr.vmem [resolvable:$true] %s37_s23 }
  0x18   :  { %s1482_s24 = scalar_lea.vmem %s38_s23, 1024  ;;  %p1487_p11 = scmp.lt.s32.totalorder %s38_s23, %s38_s23 }
  0x19   :  { %p1483_p10 = scmp.ne.s32.totalorder %s38_s23, %s1482_s24  ;;  %p1488_p12 = scmp.lt.s32.totalorder %s1482_s24, %s1482_s24 }
  0x1b   :  { %p1489_p13 = por %p1488_p12, %p1487_p11 }
  0x1d   :  { %p1490_p0 = pnand %p1489_p13, %p1483_p10 }
  0x1f   :  { %1493 = shalt.err (!%p1490_p0)
}
  0x20   :  { %40 = dma.hbm_to_vmem [thread:$0]  %s2187_s2, 1024, %s38_s23, [#allocation6]  }
  0x21   :  { %1514 = dma.done.wait [#allocation3], 128  }
  0x22   :  { %1515 = vsyncadd [#allocation3], 4294967168  ;;  %v57_v0 = vlaneseq }
  0x23   :  { %1516 = dma.done.wait [#allocation6], 1152  }
  0x24   :  { %1517 = vsyncadd [#allocation6], 4294966144  ;;  %v1523_v1 = vmov 0.0   ;;  %v1560_v2 = vand.u32 127, %v57_v0  ;;  %vm1524_vm0 = vmmov 0   ;;  %v1525_v3 = vmov 1.0  }
  0x25   :  { %1107 = vmatprep.subr.mxu0 %v1523_v1  ;;  %1142 = vmatprep.subr.mxu1 %v1523_v1  ;;  %v1670_v4 = vld [vmem:[#allocation2] sm:$0xff]  ;;  %v63_v5 = vld [vmem:[#allocation7] sm:$0xff]  ;;  %v56_v6 = vld [vmem:[#allocation5] sm:$0xff]  ;;  %v1526_v47 = vmov -1.0   ;;  %v742_v58 = vshrl.u32 %v57_v0, 7  ;;  %s1527_s0 = smov [#allocation8]  }
  0x26   :  { %1139 = vmatprep.mubr.msk.f32.mxu0 %vm1524_vm0, %v1523_v1  ;;  %1174 = vmatprep.mubr.msk.f32.mxu1 %vm1524_vm0, %v1523_v1  ;;  %vm64_vm1 = vcmp.eq.s32.totalorder %v1560_v2, 1  ;;  %vm60_vm2 = vcmp.eq.s32.totalorder %v1560_v2, 0  ;;  %v67_v7 = vmul.f32 %v63_v5, %v1670_v4  ;;  %v59_v8 = vmul.f32 %v56_v6, %v1670_v4  ;;  %v208_v9 = vld [vmem:[#allocation7 + $0x8] sm:$0xff]  ;;  %v284_v11 = vld [vmem:[#allocation7 + $0x10] sm:$0xff]  ;;  %v360_v13 = vld [vmem:[#allocation7 + $0x18] sm:$0xff]  ;;  %s790_s2 = sshll.u32 %s1527_s0, 4  ;;  %s791_s2 = int_to_ptr.vmem [resolvable:$true] %s790_s2 }
  0x27   :  { %1108 = vmatpush3.msk.msra.mxu0 %vm64_vm1, %v1525_v3  ;;  %1143 = vmatpush3.msk.msra.mxu1 %vm60_vm2, %v1525_v3  ;;  %vm209_vm3 = vcmp.eq.s32.totalorder %v1560_v2, 2  ;;  %vm285_vm4 = vcmp.eq.s32.totalorder %v1560_v2, 3  ;;  %v212_v10 = vmul.f32 %v208_v9, %v1670_v4  ;;  %v288_v12 = vmul.f32 %v284_v11, %v1670_v4  ;;  %v436_v15 = vld [vmem:[#allocation7 + $0x20] sm:$0xff]  ;;  %v512_v17 = vld [vmem:[#allocation7 + $0x28] sm:$0xff]  ;;  %v588_v19 = vld [vmem:[#allocation7 + $0x30] sm:$0xff]  ;;  %s1494_s26 = scalar_lea.vmem %s791_s2, 128  ;;  %p1499_p2 = scmp.lt.s32.totalorder %s791_s2, %s791_s2 }
  0x28   :  { %1109 = vmatprep.subr.mxu0 %v1523_v1  ;;  %1144 = vmatprep.subr.mxu1 %v1523_v1  ;;  %vm361_vm5 = vcmp.eq.s32.totalorder %v1560_v2, 4  ;;  %vm437_vm6 = vcmp.eq.s32.totalorder %v1560_v2, 5  ;;  %v364_v14 = vmul.f32 %v360_v13, %v1670_v4  ;;  %v440_v16 = vmul.f32 %v436_v15, %v1670_v4  ;;  %v664_v21 = vld [vmem:[#allocation7 + $0x38] sm:$0xff]  ;;  %p1495_p1 = scmp.ne.s32.totalorder %s791_s2, %s1494_s26  ;;  %p1500_p3 = scmp.lt.s32.totalorder %s1494_s26, %s1494_s26 }
  0x29   :  { %1110 = vmatpush3.msk.msra.mxu0 %vm64_vm1, %v1525_v3  ;;  %1145 = vmatpush3.msk.msra.mxu1 %vm60_vm2, %v1525_v3  ;;  %vm513_vm7 = vcmp.eq.s32.totalorder %v1560_v2, 6  ;;  %vm589_vm8 = vcmp.eq.s32.totalorder %v1560_v2, 7  ;;  %v516_v18 = vmul.f32 %v512_v17, %v1670_v4  ;;  %v592_v20 = vmul.f32 %v588_v19, %v1670_v4 }
  0x2a   :  { %1111 = vmatprep.subr.mxu0 %v1523_v1  ;;  %1146 = vmatprep.subr.mxu1 %v1523_v1  ;;  %vm665_vm9 = vcmp.eq.s32.totalorder %v1560_v2, 8  ;;  %v668_v22 = vmul.f32 %v664_v21, %v1670_v4  ;;  %v745_v48 = vsel %vm60_vm2, 1.0, %v1526_v47  ;;  %v953_v57 = vadd.s32 4294967295, %v1560_v2  ;;  %p1501_p4 = por %p1500_p3, %p1499_p2 }
  0x2b   :  { %1112 = vmatpush3.msk.msra.mxu0 %vm64_vm1, %v1525_v3  ;;  %1147 = vmatpush3.msk.msra.mxu1 %vm60_vm2, %v1525_v3  ;;  %vm754_vm10 = vcmp.ge.s32.totalorder %v1560_v2, 1  ;;  %vm755_vm11 = vcmp.le.s32.totalorder %v1560_v2, 8 }
  0x2c   :  { %1113 = vmatprep.subr.mxu0 %v1523_v1  ;;  %1148 = vmatprep.subr.mxu1 %v1523_v1  ;;  %vm756_vm12 = vmand %vm754_vm10, %vm755_vm11  ;;  %vm757_vm13 = vcmp.lt.s32.totalorder %v953_v57, 8  ;;  %p1502_p5 = pnand %p1501_p4, %p1495_p1 }
  0x2d   :  { %1114 = vmatpush3.msk.msra.mxu0 %vm64_vm1, %v1525_v3  ;;  %1149 = vmatpush3.msk.msra.mxu1 %vm60_vm2, %v1525_v3  ;;  %vm758_vm14 = vmand %vm756_vm12, %vm757_vm13 }
  0x2e   :  { %1115 = vmatprep.subr.mxu0 %v1523_v1  ;;  %1150 = vmatprep.subr.mxu1 %v1523_v1  ;;  %vm759_vm15 = vmor %vm60_vm2, %vm758_vm14 }
  0x2f   :  { %1116 = vmatpush3.msk.msra.mxu0 %vm64_vm1, %v1525_v3  ;;  %1151 = vmatpush3.msk.msra.mxu1 %vm60_vm2, %v1525_v3 }
  0x30   :  { %1117 = vmatprep.subr.mxu0 %v1523_v1  ;;  %1152 = vmatprep.subr.mxu1 %v1523_v1 }
  0x31   :  { %1118 = vmatpush3.msk.msra.mxu0 %vm64_vm1, %v1525_v3  ;;  %1153 = vmatpush3.msk.msra.mxu1 %vm60_vm2, %v1525_v3 }
  0x32   :  { %1119 = vmatprep.subr.mxu0 %v1523_v1  ;;  %1154 = vmatprep.subr.mxu1 %v1523_v1 }
  0x33   :  { %1120 = vmatpush3.msk.msra.mxu0 %vm64_vm1, %v1525_v3  ;;  %1155 = vmatpush3.msk.msra.mxu1 %vm60_vm2, %v1525_v3 }
  0x34   :  { %1121 = vmatprep.subr.mxu0 %v1523_v1  ;;  %1156 = vmatprep.subr.mxu1 %v1523_v1 }
  0x35   :  { %1122 = vmatpush3.msk.msra.mxu0 %vm64_vm1, %v1525_v3  ;;  %1157 = vmatpush3.msk.msra.mxu1 %vm60_vm2, %v1525_v3 }
  0x36   :  { %1123 = vmatprep.subr.mxu0 %v1523_v1  ;;  %1158 = vmatprep.subr.mxu1 %v1523_v1 }
  0x37   :  { %1124 = vmatpush3.msk.msra.mxu0 %vm64_vm1, %v1525_v3  ;;  %1159 = vmatpush3.msk.msra.mxu1 %vm60_vm2, %v1525_v3 }
  0x38   :  { %1125 = vmatprep.subr.mxu0 %v1523_v1  ;;  %1160 = vmatprep.subr.mxu1 %v1523_v1 }
  0x39   :  { %1126 = vmatpush3.msk.msra.mxu0 %vm64_vm1, %v1525_v3  ;;  %1161 = vmatpush3.msk.msra.mxu1 %vm60_vm2, %v1525_v3 }
  0x3a   :  { %1127 = vmatprep.subr.mxu0 %v1523_v1  ;;  %1162 = vmatprep.subr.mxu1 %v1523_v1 }
  0x3b   :  { %1128 = vmatpush3.msk.msra.mxu0 %vm64_vm1, %v1525_v3  ;;  %1163 = vmatpush3.msk.msra.mxu1 %vm60_vm2, %v1525_v3 }
  0x3c   :  { %1129 = vmatprep.subr.mxu0 %v1523_v1  ;;  %1164 = vmatprep.subr.mxu1 %v1523_v1 }
  0x3d   :  { %1130 = vmatpush3.msk.msra.mxu0 %vm64_vm1, %v1525_v3  ;;  %1165 = vmatpush3.msk.msra.mxu1 %vm60_vm2, %v1525_v3 }
  0x3e   :  { %1131 = vmatprep.subr.mxu0 %v1523_v1  ;;  %1166 = vmatprep.subr.mxu1 %v1523_v1 }
  0x3f   :  { %1132 = vmatpush3.msk.msra.mxu0 %vm64_vm1, %v1525_v3  ;;  %1167 = vmatpush3.msk.msra.mxu1 %vm60_vm2, %v1525_v3 }
  0x40   :  { %1133 = vmatprep.subr.mxu0 %v1523_v1  ;;  %1168 = vmatprep.subr.mxu1 %v1523_v1 }
  0x41   :  { %1134 = vmatpush3.msk.msra.mxu0 %vm64_vm1, %v1525_v3  ;;  %1169 = vmatpush3.msk.msra.mxu1 %vm60_vm2, %v1525_v3 }
  0x42   :  { %1135 = vmatprep.subr.mxu0 %v1523_v1  ;;  %1170 = vmatprep.subr.mxu1 %v1523_v1 }
  0x43   :  { %1136 = vmatpush3.msk.msra.mxu0 %vm64_vm1, %v1525_v3  ;;  %1171 = vmatpush3.msk.msra.mxu1 %vm60_vm2, %v1525_v3 }
  0x44   :  { %1137 = vmatprep.subr.mxu0 %v1523_v1  ;;  %1172 = vmatprep.subr.mxu1 %v1523_v1 }
  0x45   :  { %1138 = vmatpush3.msk.msra.mxu0 %vm64_vm1, %v1525_v3  ;;  %1173 = vmatpush3.msk.msra.mxu1 %vm60_vm2, %v1525_v3 }
  0x46   :  { %1140 = vmatmul.mubr.f32.vlgmr.msra.gmra.mxu0 %v67_v7  ;;  %1177 = vmatprep.subr.mxu0 %v1523_v1 }
  0x47   :  { %1175 = vmatmul.mubr.f32.vlgmr.msra.gmra.mxu1 %v59_v8  ;;  %1178 = vmatpush3.msk.msra.mxu0 %vm209_vm3, %v1525_v3 }
  0x48   :  { %1179 = vmatprep.subr.mxu0 %v1523_v1  ;;  %1212 = vmatprep.subr.mxu1 %v1523_v1 }
  0x49   :  { %1180 = vmatpush3.msk.msra.mxu0 %vm209_vm3, %v1525_v3  ;;  %1213 = vmatpush3.msk.msra.mxu1 %vm285_vm4, %v1525_v3 }
  0x4a   :  { %1181 = vmatprep.subr.mxu0 %v1523_v1  ;;  %1214 = vmatprep.subr.mxu1 %v1523_v1 }
  0x4b   :  { %1182 = vmatpush3.msk.msra.mxu0 %vm209_vm3, %v1525_v3  ;;  %1215 = vmatpush3.msk.msra.mxu1 %vm285_vm4, %v1525_v3 }
  0x4c   :  { %1183 = vmatprep.subr.mxu0 %v1523_v1  ;;  %1216 = vmatprep.subr.mxu1 %v1523_v1 }
  0x4d   :  { %1184 = vmatpush3.msk.msra.mxu0 %vm209_vm3, %v1525_v3  ;;  %1217 = vmatpush3.msk.msra.mxu1 %vm285_vm4, %v1525_v3 }
  0x4e   :  { %1185 = vmatprep.subr.mxu0 %v1523_v1  ;;  %1218 = vmatprep.subr.mxu1 %v1523_v1 }
  0x4f   :  { %1186 = vmatpush3.msk.msra.mxu0 %vm209_vm3, %v1525_v3  ;;  %1219 = vmatpush3.msk.msra.mxu1 %vm285_vm4, %v1525_v3 }
  0x50   :  { %1187 = vmatprep.subr.mxu0 %v1523_v1  ;;  %1220 = vmatprep.subr.mxu1 %v1523_v1 }
  0x51   :  { %1188 = vmatpush3.msk.msra.mxu0 %vm209_vm3, %v1525_v3  ;;  %1221 = vmatpush3.msk.msra.mxu1 %vm285_vm4, %v1525_v3 }
  0x52   :  { %1189 = vmatprep.subr.mxu0 %v1523_v1  ;;  %1222 = vmatprep.subr.mxu1 %v1523_v1 }
  0x53   :  { %1190 = vmatpush3.msk.msra.mxu0 %vm209_vm3, %v1525_v3  ;;  %1223 = vmatpush3.msk.msra.mxu1 %vm285_vm4, %v1525_v3 }
  0x54   :  { %1191 = vmatprep.subr.mxu0 %v1523_v1  ;;  %1224 = vmatprep.subr.mxu1 %v1523_v1 }
  0x55   :  { %1192 = vmatpush3.msk.msra.mxu0 %vm209_vm3, %v1525_v3  ;;  %1225 = vmatpush3.msk.msra.mxu1 %vm285_vm4, %v1525_v3 }
  0x56   :  { %1193 = vmatprep.subr.mxu0 %v1523_v1  ;;  %1226 = vmatprep.subr.mxu1 %v1523_v1 }
  0x57   :  { %1194 = vmatpush3.msk.msra.mxu0 %vm209_vm3, %v1525_v3  ;;  %1227 = vmatpush3.msk.msra.mxu1 %vm285_vm4, %v1525_v3 }
  0x58   :  { %1195 = vmatprep.subr.mxu0 %v1523_v1  ;;  %1228 = vmatprep.subr.mxu1 %v1523_v1 }
  0x59   :  { %1196 = vmatpush3.msk.msra.mxu0 %vm209_vm3, %v1525_v3  ;;  %1229 = vmatpush3.msk.msra.mxu1 %vm285_vm4, %v1525_v3 }
  0x5a   :  { %1197 = vmatprep.subr.mxu0 %v1523_v1  ;;  %1230 = vmatprep.subr.mxu1 %v1523_v1 }
  0x5b   :  { %1198 = vmatpush3.msk.msra.mxu0 %vm209_vm3, %v1525_v3  ;;  %1231 = vmatpush3.msk.msra.mxu1 %vm285_vm4, %v1525_v3 }
  0x5c   :  { %1199 = vmatprep.subr.mxu0 %v1523_v1  ;;  %1232 = vmatprep.subr.mxu1 %v1523_v1 }
  0x5d   :  { %1200 = vmatpush3.msk.msra.mxu0 %vm209_vm3, %v1525_v3  ;;  %1233 = vmatpush3.msk.msra.mxu1 %vm285_vm4, %v1525_v3 }
  0x5e   :  { %1201 = vmatprep.subr.mxu0 %v1523_v1  ;;  %1234 = vmatprep.subr.mxu1 %v1523_v1 }
  0x5f   :  { %1202 = vmatpush3.msk.msra.mxu0 %vm209_vm3, %v1525_v3  ;;  %1235 = vmatpush3.msk.msra.mxu1 %vm285_vm4, %v1525_v3 }
  0x60   :  { %1203 = vmatprep.subr.mxu0 %v1523_v1  ;;  %1236 = vmatprep.subr.mxu1 %v1523_v1 }
  0x61   :  { %1204 = vmatpush3.msk.msra.mxu0 %vm209_vm3, %v1525_v3  ;;  %1237 = vmatpush3.msk.msra.mxu1 %vm285_vm4, %v1525_v3 }
  0x62   :  { %1205 = vmatprep.subr.mxu0 %v1523_v1  ;;  %1238 = vmatprep.subr.mxu1 %v1523_v1 }
  0x63   :  { %1206 = vmatpush3.msk.msra.mxu0 %vm209_vm3, %v1525_v3  ;;  %1239 = vmatpush3.msk.msra.mxu1 %vm285_vm4, %v1525_v3 }
  0x64   :  { %1207 = vmatprep.subr.mxu0 %v1523_v1  ;;  %1240 = vmatprep.subr.mxu1 %v1523_v1 }
  0x65   :  { %1208 = vmatpush3.msk.msra.mxu0 %vm209_vm3, %v1525_v3  ;;  %1209 = vmatprep.mubr.msk.f32.mxu0 %vm1524_vm0, %v1523_v1 }
  0x66   :  { %1241 = vmatpush3.msk.msra.mxu1 %vm285_vm4, %v1525_v3  ;;  %1210 = vmatmul.mubr.f32.vlgmr.msra.gmra.mxu0 %v212_v10 }
  0x67   :  { %1242 = vmatprep.subr.mxu1 %v1523_v1  ;;  %1247 = vmatprep.subr.mxu0 %v1523_v1 }
  0x68   :  { %1243 = vmatpush3.msk.msra.mxu1 %vm285_vm4, %v1525_v3  ;;  %1244 = vmatprep.mubr.msk.f32.mxu1 %vm1524_vm0, %v1523_v1 }
  0x69   :  { %1248 = vmatpush3.msk.msra.mxu0 %vm361_vm5, %v1525_v3  ;;  %1245 = vmatmul.mubr.f32.vlgmr.msra.gmra.mxu1 %v288_v12 }
  0x6a   :  { %1249 = vmatprep.subr.mxu0 %v1523_v1  ;;  %1282 = vmatprep.subr.mxu1 %v1523_v1 }
  0x6b   :  { %1250 = vmatpush3.msk.msra.mxu0 %vm361_vm5, %v1525_v3  ;;  %1283 = vmatpush3.msk.msra.mxu1 %vm437_vm6, %v1525_v3 }
  0x6c   :  { %1251 = vmatprep.subr.mxu0 %v1523_v1  ;;  %1284 = vmatprep.subr.mxu1 %v1523_v1 }
  0x6d   :  { %1252 = vmatpush3.msk.msra.mxu0 %vm361_vm5, %v1525_v3  ;;  %1285 = vmatpush3.msk.msra.mxu1 %vm437_vm6, %v1525_v3 }
  0x6e   :  { %1253 = vmatprep.subr.mxu0 %v1523_v1  ;;  %1286 = vmatprep.subr.mxu1 %v1523_v1 }
  0x6f   :  { %1254 = vmatpush3.msk.msra.mxu0 %vm361_vm5, %v1525_v3  ;;  %1287 = vmatpush3.msk.msra.mxu1 %vm437_vm6, %v1525_v3 }
  0x70   :  { %1255 = vmatprep.subr.mxu0 %v1523_v1  ;;  %1288 = vmatprep.subr.mxu1 %v1523_v1 }
  0x71   :  { %1256 = vmatpush3.msk.msra.mxu0 %vm361_vm5, %v1525_v3  ;;  %1289 = vmatpush3.msk.msra.mxu1 %vm437_vm6, %v1525_v3 }
  0x72   :  { %1257 = vmatprep.subr.mxu0 %v1523_v1  ;;  %1290 = vmatprep.subr.mxu1 %v1523_v1 }
  0x73   :  { %1258 = vmatpush3.msk.msra.mxu0 %vm361_vm5, %v1525_v3  ;;  %1291 = vmatpush3.msk.msra.mxu1 %vm437_vm6, %v1525_v3 }
  0x74   :  { %1259 = vmatprep.subr.mxu0 %v1523_v1  ;;  %1292 = vmatprep.subr.mxu1 %v1523_v1 }
  0x75   :  { %1260 = vmatpush3.msk.msra.mxu0 %vm361_vm5, %v1525_v3  ;;  %1293 = vmatpush3.msk.msra.mxu1 %vm437_vm6, %v1525_v3 }
  0x76   :  { %1261 = vmatprep.subr.mxu0 %v1523_v1  ;;  %1294 = vmatprep.subr.mxu1 %v1523_v1 }
  0x77   :  { %1262 = vmatpush3.msk.msra.mxu0 %vm361_vm5, %v1525_v3  ;;  %1295 = vmatpush3.msk.msra.mxu1 %vm437_vm6, %v1525_v3 }
  0x78   :  { %1263 = vmatprep.subr.mxu0 %v1523_v1  ;;  %1296 = vmatprep.subr.mxu1 %v1523_v1 }
  0x79   :  { %1264 = vmatpush3.msk.msra.mxu0 %vm361_vm5, %v1525_v3  ;;  %1297 = vmatpush3.msk.msra.mxu1 %vm437_vm6, %v1525_v3 }
  0x7a   :  { %1265 = vmatprep.subr.mxu0 %v1523_v1  ;;  %1298 = vmatprep.subr.mxu1 %v1523_v1 }
  0x7b   :  { %1266 = vmatpush3.msk.msra.mxu0 %vm361_vm5, %v1525_v3  ;;  %1299 = vmatpush3.msk.msra.mxu1 %vm437_vm6, %v1525_v3 }
  0x7c   :  { %1267 = vmatprep.subr.mxu0 %v1523_v1  ;;  %1300 = vmatprep.subr.mxu1 %v1523_v1 }
  0x7d   :  { %1268 = vmatpush3.msk.msra.mxu0 %vm361_vm5, %v1525_v3  ;;  %1301 = vmatpush3.msk.msra.mxu1 %vm437_vm6, %v1525_v3 }
  0x7e   :  { %1269 = vmatprep.subr.mxu0 %v1523_v1  ;;  %1302 = vmatprep.subr.mxu1 %v1523_v1 }
  0x7f   :  { %1270 = vmatpush3.msk.msra.mxu0 %vm361_vm5, %v1525_v3  ;;  %1303 = vmatpush3.msk.msra.mxu1 %vm437_vm6, %v1525_v3 }
  0x80   :  { %1271 = vmatprep.subr.mxu0 %v1523_v1  ;;  %1304 = vmatprep.subr.mxu1 %v1523_v1 }
  0x81   :  { %1272 = vmatpush3.msk.msra.mxu0 %vm361_vm5, %v1525_v3  ;;  %1305 = vmatpush3.msk.msra.mxu1 %vm437_vm6, %v1525_v3 }
  0x82   :  { %1273 = vmatprep.subr.mxu0 %v1523_v1  ;;  %1306 = vmatprep.subr.mxu1 %v1523_v1 }
  0x83   :  { %1274 = vmatpush3.msk.msra.mxu0 %vm361_vm5, %v1525_v3  ;;  %1307 = vmatpush3.msk.msra.mxu1 %vm437_vm6, %v1525_v3 }
  0x84   :  { %1275 = vmatprep.subr.mxu0 %v1523_v1  ;;  %1308 = vmatprep.subr.mxu1 %v1523_v1 }
  0x85   :  { %1276 = vmatpush3.msk.msra.mxu0 %vm361_vm5, %v1525_v3  ;;  %1309 = vmatpush3.msk.msra.mxu1 %vm437_vm6, %v1525_v3 }
  0x86   :  { %1277 = vmatprep.subr.mxu0 %v1523_v1  ;;  %1310 = vmatprep.subr.mxu1 %v1523_v1 }
  0x87   :  { %1278 = vmatpush3.msk.msra.mxu0 %vm361_vm5, %v1525_v3  ;;  %1279 = vmatprep.mubr.msk.f32.mxu0 %vm1524_vm0, %v1523_v1 }
  0x88   :  { %1311 = vmatpush3.msk.msra.mxu1 %vm437_vm6, %v1525_v3  ;;  %1280 = vmatmul.mubr.f32.vlgmr.msra.gmra.mxu0 %v364_v14 }
  0x89   :  { %1312 = vmatprep.subr.mxu1 %v1523_v1  ;;  %1317 = vmatprep.subr.mxu0 %v1523_v1 }
  0x8a   :  { %1313 = vmatpush3.msk.msra.mxu1 %vm437_vm6, %v1525_v3  ;;  %1314 = vmatprep.mubr.msk.f32.mxu1 %vm1524_vm0, %v1523_v1 }
  0x8b   :  { %1318 = vmatpush3.msk.msra.mxu0 %vm513_vm7, %v1525_v3  ;;  %1315 = vmatmul.mubr.f32.vlgmr.msra.gmra.mxu1 %v440_v16 }
  0x8c   :  { %1319 = vmatprep.subr.mxu0 %v1523_v1  ;;  %1352 = vmatprep.subr.mxu1 %v1523_v1 }
  0x8d   :  { %1320 = vmatpush3.msk.msra.mxu0 %vm513_vm7, %v1525_v3  ;;  %1353 = vmatpush3.msk.msra.mxu1 %vm589_vm8, %v1525_v3 }
  0x8e   :  { %1321 = vmatprep.subr.mxu0 %v1523_v1  ;;  %1354 = vmatprep.subr.mxu1 %v1523_v1 }
  0x8f   :  { %1322 = vmatpush3.msk.msra.mxu0 %vm513_vm7, %v1525_v3  ;;  %1355 = vmatpush3.msk.msra.mxu1 %vm589_vm8, %v1525_v3 }
  0x90   :  { %1323 = vmatprep.subr.mxu0 %v1523_v1  ;;  %1356 = vmatprep.subr.mxu1 %v1523_v1 }
  0x91   :  { %1324 = vmatpush3.msk.msra.mxu0 %vm513_vm7, %v1525_v3  ;;  %1357 = vmatpush3.msk.msra.mxu1 %vm589_vm8, %v1525_v3 }
  0x92   :  { %1325 = vmatprep.subr.mxu0 %v1523_v1  ;;  %1358 = vmatprep.subr.mxu1 %v1523_v1 }
  0x93   :  { %1326 = vmatpush3.msk.msra.mxu0 %vm513_vm7, %v1525_v3  ;;  %1359 = vmatpush3.msk.msra.mxu1 %vm589_vm8, %v1525_v3 }
  0x94   :  { %1327 = vmatprep.subr.mxu0 %v1523_v1  ;;  %1360 = vmatprep.subr.mxu1 %v1523_v1 }
  0x95   :  { %1328 = vmatpush3.msk.msra.mxu0 %vm513_vm7, %v1525_v3  ;;  %1361 = vmatpush3.msk.msra.mxu1 %vm589_vm8, %v1525_v3 }
  0x96   :  { %1329 = vmatprep.subr.mxu0 %v1523_v1  ;;  %1362 = vmatprep.subr.mxu1 %v1523_v1 }
  0x97   :  { %1330 = vmatpush3.msk.msra.mxu0 %vm513_vm7, %v1525_v3  ;;  %1363 = vmatpush3.msk.msra.mxu1 %vm589_vm8, %v1525_v3 }
  0x98   :  { %1331 = vmatprep.subr.mxu0 %v1523_v1  ;;  %1364 = vmatprep.subr.mxu1 %v1523_v1 }
  0x99   :  { %1332 = vmatpush3.msk.msra.mxu0 %vm513_vm7, %v1525_v3  ;;  %1365 = vmatpush3.msk.msra.mxu1 %vm589_vm8, %v1525_v3 }
  0x9a   :  { %1333 = vmatprep.subr.mxu0 %v1523_v1  ;;  %1366 = vmatprep.subr.mxu1 %v1523_v1 }
  0x9b   :  { %1334 = vmatpush3.msk.msra.mxu0 %vm513_vm7, %v1525_v3  ;;  %1367 = vmatpush3.msk.msra.mxu1 %vm589_vm8, %v1525_v3 }
  0x9c   :  { %1335 = vmatprep.subr.mxu0 %v1523_v1  ;;  %1368 = vmatprep.subr.mxu1 %v1523_v1 }
  0x9d   :  { %1336 = vmatpush3.msk.msra.mxu0 %vm513_vm7, %v1525_v3  ;;  %1369 = vmatpush3.msk.msra.mxu1 %vm589_vm8, %v1525_v3 }
  0x9e   :  { %1337 = vmatprep.subr.mxu0 %v1523_v1  ;;  %1370 = vmatprep.subr.mxu1 %v1523_v1 }
  0x9f   :  { %1338 = vmatpush3.msk.msra.mxu0 %vm513_vm7, %v1525_v3  ;;  %1371 = vmatpush3.msk.msra.mxu1 %vm589_vm8, %v1525_v3 }
  0xa0   :  { %1339 = vmatprep.subr.mxu0 %v1523_v1  ;;  %1372 = vmatprep.subr.mxu1 %v1523_v1 }
  0xa1   :  { %1340 = vmatpush3.msk.msra.mxu0 %vm513_vm7, %v1525_v3  ;;  %1373 = vmatpush3.msk.msra.mxu1 %vm589_vm8, %v1525_v3 }
  0xa2   :  { %1341 = vmatprep.subr.mxu0 %v1523_v1  ;;  %1374 = vmatprep.subr.mxu1 %v1523_v1 }
  0xa3   :  { %1342 = vmatpush3.msk.msra.mxu0 %vm513_vm7, %v1525_v3  ;;  %1375 = vmatpush3.msk.msra.mxu1 %vm589_vm8, %v1525_v3 }
  0xa4   :  { %1343 = vmatprep.subr.mxu0 %v1523_v1  ;;  %1376 = vmatprep.subr.mxu1 %v1523_v1 }
  0xa5   :  { %1344 = vmatpush3.msk.msra.mxu0 %vm513_vm7, %v1525_v3  ;;  %1377 = vmatpush3.msk.msra.mxu1 %vm589_vm8, %v1525_v3 }
  0xa6   :  { %1345 = vmatprep.subr.mxu0 %v1523_v1  ;;  %1378 = vmatprep.subr.mxu1 %v1523_v1 }
  0xa7   :  { %1346 = vmatpush3.msk.msra.mxu0 %vm513_vm7, %v1525_v3  ;;  %1379 = vmatpush3.msk.msra.mxu1 %vm589_vm8, %v1525_v3 }
  0xa8   :  { %1347 = vmatprep.subr.mxu0 %v1523_v1  ;;  %1380 = vmatprep.subr.mxu1 %v1523_v1 }
  0xa9   :  { %1348 = vmatpush3.msk.msra.mxu0 %vm513_vm7, %v1525_v3  ;;  %1349 = vmatprep.mubr.msk.f32.mxu0 %vm1524_vm0, %v1523_v1 }
  0xaa   :  { %1381 = vmatpush3.msk.msra.mxu1 %vm589_vm8, %v1525_v3  ;;  %1350 = vmatmul.mubr.f32.vlgmr.msra.gmra.mxu0 %v516_v18 }
  0xab   :  { %1382 = vmatprep.subr.mxu1 %v1523_v1  ;;  %1387 = vmatprep.subr.mxu0 %v1523_v1 }
  0xac   :  { %1383 = vmatpush3.msk.msra.mxu1 %vm589_vm8, %v1525_v3  ;;  %1384 = vmatprep.mubr.msk.f32.mxu1 %vm1524_vm0, %v1523_v1 }
  0xad   :  { %1388 = vmatpush3.msk.msra.mxu0 %vm665_vm9, %v1525_v3  ;;  %1385 = vmatmul.mubr.f32.vlgmr.msra.gmra.mxu1 %v592_v20 }
  0xae   :  { %1389 = vmatprep.subr.mxu0 %v1523_v1  ;;  %1419 = vmatprep.mubr.msk.f32.mxu0 %vm1524_vm0, %v1523_v1  ;;  %vm760_vm0 = vcmp.lt.s32.totalorder %v742_v58, 5 }
  0xaf   :  { %1390 = vmatpush3.msk.msra.mxu0 %vm665_vm9, %v1525_v3  ;;  %vm761_vm1 = vmand %vm759_vm15, %vm760_vm0 }
  0xb0   :  { %1391 = vmatprep.subr.mxu0 %v1523_v1 }
  0xb1   :  { %1392 = vmatpush3.msk.msra.mxu0 %vm665_vm9, %v1525_v3 }
  0xb2   :  { %1393 = vmatprep.subr.mxu0 %v1523_v1 }
  0xb3   :  { %1394 = vmatpush3.msk.msra.mxu0 %vm665_vm9, %v1525_v3 }
  0xb4   :  { %1395 = vmatprep.subr.mxu0 %v1523_v1 }
  0xb5   :  { %1396 = vmatpush3.msk.msra.mxu0 %vm665_vm9, %v1525_v3 }
  0xb6   :  { %1397 = vmatprep.subr.mxu0 %v1523_v1 }
  0xb7   :  { %1398 = vmatpush3.msk.msra.mxu0 %vm665_vm9, %v1525_v3 }
  0xb8   :  { %1399 = vmatprep.subr.mxu0 %v1523_v1 }
  0xb9   :  { %1400 = vmatpush3.msk.msra.mxu0 %vm665_vm9, %v1525_v3 }
  0xba   :  { %1401 = vmatprep.subr.mxu0 %v1523_v1 }
  0xbb   :  { %1402 = vmatpush3.msk.msra.mxu0 %vm665_vm9, %v1525_v3 }
  0xbc   :  { %1403 = vmatprep.subr.mxu0 %v1523_v1 }
  0xbd   :  { %1404 = vmatpush3.msk.msra.mxu0 %vm665_vm9, %v1525_v3 }
  0xbe   :  { %1405 = vmatprep.subr.mxu0 %v1523_v1 }
  0xbf   :  { %1406 = vmatpush3.msk.msra.mxu0 %vm665_vm9, %v1525_v3 }
  0xc0   :  { %1407 = vmatprep.subr.mxu0 %v1523_v1 }
  0xc1   :  { %1408 = vmatpush3.msk.msra.mxu0 %vm665_vm9, %v1525_v3 }
  0xc2   :  { %1409 = vmatprep.subr.mxu0 %v1523_v1 }
  0xc3   :  { %1410 = vmatpush3.msk.msra.mxu0 %vm665_vm9, %v1525_v3 }
  0xc4   :  { %1411 = vmatprep.subr.mxu0 %v1523_v1 }
  0xc5   :  { %1412 = vmatpush3.msk.msra.mxu0 %vm665_vm9, %v1525_v3 }
  0xc6   :  { %1413 = vmatprep.subr.mxu0 %v1523_v1 }
  0xc7   :  { %1414 = vmatpush3.msk.msra.mxu0 %vm665_vm9, %v1525_v3 }
  0xc8   :  { %1415 = vmatprep.subr.mxu0 %v1523_v1 }
  0xc9   :  { %1416 = vmatpush3.msk.msra.mxu0 %vm665_vm9, %v1525_v3 }
  0xca   :  { %1417 = vmatprep.subr.mxu0 %v1523_v1 }
  0xcb   :  { %1418 = vmatpush3.msk.msra.mxu0 %vm665_vm9, %v1525_v3 }
  0xcc   :  { %1420 = vmatmul.mubr.f32.vlgmr.msra.gmra.mxu0 %v668_v22 }
 0x106   :  { %v134_v23 = vpop.f32.mrf.mxu0 }
 0x107   :  { %v204_v24 = vpop.f32.mrf.mxu1 }
 0x108   :  { %v205_v25 = vadd.f32 %v204_v24, %v134_v23  ;;  %v1141_v26 = vpop.f32.mrf.mxu0 }
 0x109   :  { %v1176_v27 = vpop.f32.mrf.mxu1 }
 0x126   :  { %v279_v28 = vpop.f32.mrf.mxu0 }
 0x127   :  { %v283_v29 = vadd.f32 %v279_v28, %v205_v25 }
 0x128   :  { %v1211_v30 = vpop.f32.mrf.mxu0 }
 0x129   :  { %v355_v31 = vpop.f32.mrf.mxu1 }
 0x12a   :  { %v359_v32 = vadd.f32 %v355_v31, %v283_v29 }
 0x12b   :  { %v1246_v33 = vpop.f32.mrf.mxu1 }
 0x148   :  { %v431_v34 = vpop.f32.mrf.mxu0 }
 0x149   :  { %v435_v42 = vadd.f32 %v431_v34, %v359_v32 }
 0x14a   :  { %v1281_v35 = vpop.f32.mrf.mxu0 }
 0x14b   :  { %v507_v36 = vpop.f32.mrf.mxu1 }
 0x14c   :  { %v511_v43 = vadd.f32 %v507_v36, %v435_v42 }
 0x14d   :  { %v1316_v37 = vpop.f32.mrf.mxu1 }
 0x16a   :  { %v583_v38 = vpop.f32.mrf.mxu0 }
 0x16b   :  { %v587_v44 = vadd.f32 %v583_v38, %v511_v43 }
 0x16c   :  { %v1351_v39 = vpop.f32.mrf.mxu0 }
 0x16d   :  { %v659_v40 = vpop.f32.mrf.mxu1 }
 0x16e   :  { %v663_v45 = vadd.f32 %v659_v40, %v587_v44 }
 0x16f   :  { %v1386_v41 = vpop.f32.mrf.mxu1 }
 0x18c   :  { %v735_v46 = vpop.f32.mrf.mxu0 }
 0x18d   :  { %v739_v49 = vadd.f32 %v735_v46, %v663_v45 }
 0x18e   :  { %v1421_v50 = vpop.f32.mrf.mxu0 }
 0x18f   :  { %v762_v51 = vmul.f32 %v745_v48, %v739_v49 }
 0x191   :  { %v764_v52 = vand.u32 2147483647, %v762_v51  ;;  %v763_v60 = vmin.f32 %v762_v51, 0.0 }
 0x193   :  { %v765_v53 = vsub.f32 0.0, %v764_v52 }
 0x195   :  { %v766_v54 = vmul.f32 1.442695, %v765_v53 }
 0x197   :  { %1430 = vpow2.f32 %v766_v54 }
 0x1a4   :  { %v1431_v55 = vpop.eup %1430 }
 0x1a5   :  { %v768_v56 = vadd.f32 1.0, %v1431_v55 }
 0x1a7   :  { %1432 = vlog2.f32 %v768_v56 }
 0x1b4   :  { %v1433_v59 = vpop.eup %1432 }
 0x1b5   :  { %v770_v61 = vmul.f32 0.6931472, %v1433_v59 }
 0x1b7   :  { %v771_v62 = vsub.f32 %v763_v60, %v770_v61 }
 0x1b9   :  { %v772_v63 = vsel %vm761_vm1, %v771_v62, 0.0 }
 0x1ba   :  { %v773_v1 = vrot.slane %v772_v63, 4 }
 0x1bc   :  { %v774_v3 = vadd.f32 %v773_v1, %v772_v63 }
 0x1be   :  { %v775_v4 = vrot.slane %v774_v3, 2 }
 0x1c0   :  { %v776_v5 = vadd.f32 %v775_v4, %v774_v3 }
 0x1c2   :  { %v777_v6 = vrot.slane %v776_v5, 1 }
 0x1c4   :  { %v778_v7 = vadd.f32 %v777_v6, %v776_v5 }
 0x1c6   :  { %779 = vadd.xlane.f32.xlu0 %v778_v7 }
 0x24f   :  { %v780_v0 = vpop.xlane.xlu0 %779 }
 0x250   :  { %783 = vst [vmem:[#allocation8] sm:$0xff] %v780_v0 }
 0x251   :  { %1505 = shalt.err (!%p1502_p5)
}
 0x252   :  { %793 = dma.vmem_to_hbm [thread:$0]  %s791_s2, 128, %s2188_s3, [#allocation4]  }
 0x253   :  { %1518 = dma.done.wait [#allocation4], 128  }
 0x254   :  { %1519 = vsyncadd [#allocation4], 4294967168 }
 0x255   :  { %797 = vsyncpa [#allocation3], 1 }
 0x256   :  { %798 = vsyncpa [#allocation6], 1 }
 0x257   :  { %799 = vsyncpa [#allocation4], 1 }

</bundles_post_ra>
